<compile_context>
chip_gen: v7x
topology: tpu7x:2x2x1
jax: 0.10.0
libtpu: 0.0.40
codegen_flags: <defaults>
</compile_context>

<pallas_src>
import jax
import jax.numpy as jnp
from jax.experimental import pallas as pl
from jax.experimental.pallas import tpu as pltpu


_LANE_CHOICES = (1024, 512, 256, 128)   # lane-dense slab widths (multiples of 128)
_TILE_ROWS = 1024                       # 1024 x 1024 x 4B = 4 MiB f32 per tile
                                        # 2 in + 2 out buffers = 16 MiB
_VMEM_LIMIT_BYTES = 48 * 1024 * 1024    # lifts v5e's 16 MiB scoped default; leaves
                                        # headroom under v7x's 64 MiB physical VMEM/TC


def _elemwise_kernel(x_ref, o_ref):
    # Keep the (x + 2) - 3 rounding of the PyTorch chain and fold only the
    # exact *4 / 2 -> *2.  The extra VPU add is free for an HBM-bound kernel
    # and preserves bit-exact parity with the reference op chain.
    o_ref[...] = ((x_ref[...] + 2.0) - 3.0) * 2.0


def _forward_pallas_2d(x2d, *, donate=False):
    rows, lane = x2d.shape

    if rows <= 8:
        # Full-extent block (uses the "equal to full dim" escape of the (8,128)
        # rule).  Tiny inputs are launch-overhead dominated anyway.
        tile_rows = rows
    else:
        # Aim for at least 2 grid steps so dimension_semantics=("parallel",)
        # can shard rows across v7x's two TensorCores, capped at _TILE_ROWS,
        # rounded up to a sublane multiple of 8 (partial trailing blocks are
        # masked and harmless for an elementwise op).
        half = -(-rows // 2)
        tile_rows = min(_TILE_ROWS, ((half + 7) // 8) * 8)

    grid = (pl.cdiv(rows, tile_rows),)

    return pl.pallas_call(
        _elemwise_kernel,
        out_shape=jax.ShapeDtypeStruct((rows, lane), x2d.dtype),
        grid_spec=pltpu.PrefetchScalarGridSpec(
            num_scalar_prefetch=0,
            grid=grid,
            # Default double-buffering is the right depth for pure streaming;
            # extra VMEM is spent on larger tiles instead of deeper pipelines.
            in_specs=[pl.BlockSpec((tile_rows, lane), lambda i: (i, 0))],
            out_specs=pl.BlockSpec((tile_rows, lane), lambda i: (i, 0)),
        ),
        compiler_params=pltpu.CompilerParams(
            dimension_semantics=("parallel",),
            vmem_limit_bytes=_VMEM_LIMIT_BYTES,
        ),
        # Caller can opt into aliasing when x is donatable (drops the second
        # full-size HBM buffer); off by default since the demo reuses x.
        input_output_aliases=({0: 0} if donate else {}),
    )(x2d)


def pt_module_forward(x, *, donate=False):
    """Pallas implementation of PtModule.forward: ((x + 2) - 3) * 4 / 2."""
    # PyTorch's `/ 2` is true division: integer inputs promote to float32.
    if not jnp.issubdtype(x.dtype, jnp.floating):
        x = x.astype(jnp.float32)

    orig_shape = x.shape
    total = x.size

    lane = next((l for l in _LANE_CHOICES if total % l == 0), None)
    if lane is None:
        # Ragged element count (not a multiple of 128): pad + slice would ~3x
        # HBM traffic for a bandwidth-bound op, so let XLA fuse it instead.
        return ((x + 2.0) - 3.0) * 2.0

    rows = total // lane
    x2d = x.reshape(rows, lane)          # contiguous reshape: metadata-only
    out2d = _forward_pallas_2d(x2d, donate=donate)
    return out2d.reshape(orig_shape)


if __name__ == "__main__":
    key = jax.random.PRNGKey(0)
    x = jax.random.normal(key, (2, 4, 16, 16), dtype=jnp.float32)

    y = pt_module_forward(x)
    jax.block_until_ready(y)

    # Reference mirrors the PyTorch op chain exactly.
    y_ref = ((x + 2.0) - 3.0) * 4.0 / 2.0
    assert y.shape == x.shape
    assert jnp.allclose(y, y_ref, atol=1e-6, rtol=0.0), "mismatch vs reference"

    print("KERNEL_OK")
</pallas_src>

<mosaic_0001>
module attributes {stable_mosaic.version = 11 : i64} {
  func.func @_elemwise_kernel(%arg0: i32, %arg1: memref<2x1024xf32, #tpu.memory_space<vmem>>, %arg2: memref<2x1024xf32, #tpu.memory_space<vmem>>) attributes {dimension_semantics = [#tpu.dimension_semantics<parallel>], iteration_bounds = array<i64: 1>, scalar_prefetch = 0 : i64, scratch_operands = 0 : i64, tpu.core_type = #tpu.core_type<tc>, window_params = [{transform_indices = @transform_0, window_bounds = array<i64: 2, 1024>}, {transform_indices = @transform_1, window_bounds = array<i64: 2, 1024>}]} {
    %c0 = arith.constant 0 : index
    %c0_0 = arith.constant 0 : index
    %0 = vector.load %arg1[%c0, %c0_0] : memref<2x1024xf32, #tpu.memory_space<vmem>>, vector<2x1024xf32>
    %cst = arith.constant 2.000000e+00 : f32
    %1 = vector.broadcast %cst : f32 to vector<2x1024xf32>
    %2 = arith.addf %0, %1 : vector<2x1024xf32>
    %cst_1 = arith.constant 3.000000e+00 : f32
    %3 = vector.broadcast %cst_1 : f32 to vector<2x1024xf32>
    %4 = arith.subf %2, %3 : vector<2x1024xf32>
    %cst_2 = arith.constant 2.000000e+00 : f32
    %5 = vector.broadcast %cst_2 : f32 to vector<2x1024xf32>
    %6 = arith.mulf %4, %5 : vector<2x1024xf32>
    %c0_3 = arith.constant 0 : index
    %c0_4 = arith.constant 0 : index
    %7 = vector.load %arg2[%c0_3, %c0_4] : memref<2x1024xf32, #tpu.memory_space<vmem>>, vector<2x1024xf32>
    tpu.vector_store %arg2[%c0_3, %c0_4], %6 {strides = array<i32>} : memref<2x1024xf32, #tpu.memory_space<vmem>>, vector<2x1024xf32>,
    return
  }
  func.func @transform_0(%arg0: i32) -> (i32, i32) {
    %c0_i32 = arith.constant 0 : i32
    %c0_i32_0 = arith.constant 0 : i32
    return %arg0, %c0_i32 : i32, i32
  }
  func.func @transform_1(%arg0: i32) -> (i32, i32) {
    %c0_i32 = arith.constant 0 : i32
    %c0_i32_0 = arith.constant 0 : i32
    return %arg0, %c0_i32 : i32, i32
  }
}

</mosaic_0001>

<bundles_post_ra>
// kernel: tpu_custom_call.1
= control target key start
LH: loop header
LB: loop body
LE: loop exit
PB: predicated region body
PF: predicated region fallthrough
CT: control target
= control target key end

     0   :  { %6 = vsyncpa [#allocation3], 0  ;;  %s134_s0 = inlined_call_operand.hbm [shape: f32[2,1024], index: 0, kind: input, shape index: {}]   ;;  %s135_s1 = inlined_call_operand.hbm [shape: f32[2,1024], index: 1, kind: output, shape index: {}]  }
   0x1   :  { %7 = vsyncpa [#allocation4], 0  ;;  %s98_s6 = smov [#allocation2]   ;;  %s50_s10 = scalar_lea.hbm %s134_s0, 256 }
   0x2   :  { %s14_s7 = sshll.u32 %s98_s6, 4  ;;  %p51_p0 = scmp.ne.s32.totalorder %s134_s0, %s50_s10  ;;  %s15_s7 = int_to_ptr.vmem [resolvable:$true] %s14_s7 }
   0x3   :  { %p54_p1 = scmp.lt.u32.totalorder %s50_s10, %s134_s0 }
   0x5   :  { %p56_p2 = pnand %p54_p1, %p51_p0 }
   0x7   :  { %59 = shalt.err (!%p56_p2)
}
   0x8   :  { %s60_s15 = scalar_lea.vmem %s15_s7, 256  ;;  %p65_p4 = scmp.lt.s32.totalorder %s15_s7, %s15_s7 }
   0x9   :  { %p61_p3 = scmp.ne.s32.totalorder %s15_s7, %s60_s15  ;;  %p66_p5 = scmp.lt.s32.totalorder %s60_s15, %s60_s15 }
   0xb   :  { %p67_p6 = por %p66_p5, %p65_p4 }
   0xd   :  { %p68_p7 = pnand %p67_p6, %p61_p3 }
   0xf   :  { %71 = shalt.err (!%p68_p7)
}
  0x10   :  { %17 = dma.hbm_to_vmem [thread:$0]  %s134_s0, 256, %s15_s7, [#allocation3]  }
  0x11   :  { %94 = dma.done.wait [#allocation3], 256  }
  0x12   :  { %95 = vsyncadd [#allocation3], 4294967040  ;;  %v21_v0 = vld [vmem:[#allocation2] sm:$0xff]  ;;  %v22_v1 = vld [vmem:[#allocation2 + $0x8] sm:$0xff]  ;;  %s99_s18 = smov [#allocation5]  }
  0x13   :  { %v23_v2 = vadd.f32 2.0, %v21_v0  ;;  %v24_v3 = vadd.f32 2.0, %v22_v1  ;;  %s37_s19 = sshll.u32 %s99_s18, 4  ;;  %s38_s19 = int_to_ptr.vmem [resolvable:$true] %s37_s19 }
  0x14   :  { %s72_s20 = scalar_lea.vmem %s38_s19, 256  ;;  %p77_p9 = scmp.lt.s32.totalorder %s38_s19, %s38_s19 }
  0x15   :  { %v46_v4 = vadd.f32 -3.0, %v23_v2  ;;  %v47_v5 = vadd.f32 -3.0, %v24_v3  ;;  %p73_p8 = scmp.ne.s32.totalorder %s38_s19, %s72_s20  ;;  %p78_p10 = scmp.lt.s32.totalorder %s72_s20, %s72_s20 }
  0x17   :  { %v27_v6 = vmul.f32 2.0, %v46_v4  ;;  %v28_v7 = vmul.f32 2.0, %v47_v5  ;;  %p79_p11 = por %p78_p10, %p77_p9 }
  0x19   :  { %29 = vst [vmem:[#allocation5] sm:$0xff] %v27_v6  ;;  %30 = vst [vmem:[#allocation5 + $0x8] sm:$0xff] %v28_v7  ;;  %p80_p12 = pnand %p79_p11, %p73_p8 }
  0x1b   :  { %83 = shalt.err (!%p80_p12)
}
  0x1c   :  { %s84_s22 = scalar_lea.hbm %s135_s1, 256 }
  0x1d   :  { %p85_p13 = scmp.ne.s32.totalorder %s135_s1, %s84_s22  ;;  %p88_p0 = scmp.lt.u32.totalorder %s84_s22, %s135_s1 }
  0x1f   :  { %p90_p1 = pnand %p88_p0, %p85_p13 }
  0x21   :  { %93 = shalt.err (!%p90_p1)
}
  0x22   :  { %40 = dma.vmem_to_hbm [thread:$0]  %s38_s19, 256, %s135_s1, [#allocation4]  }
  0x23   :  { %96 = dma.done.wait [#allocation4], 256  }
  0x24   :  { %97 = vsyncadd [#allocation4], 4294967040 }
  0x25   :  { %44 = vsyncpa [#allocation3], 1 }
  0x26   :  { %45 = vsyncpa [#allocation4], 1 }

</bundles_post_ra>
